<compile_context>
chip_gen: v5e
topology: v5e:2x2
jax: 0.10.0
libtpu: 0.0.40
codegen_flags: <defaults>
</compile_context>

<pallas_src>
import jax
import jax.numpy as jnp
from jax import lax
from jax.experimental import pallas as pl
from jax.experimental.pallas import tpu as pltpu


def j_loss_partial_kernel(pred_ref, tgt_ref, s_ref, n_ref):
    """One grid step = (batch*split element bs, spatial tile k)."""
    k = pl.program_id(1)

    @pl.when(k == 0)
    def _init():
        s_ref[...] = jnp.zeros_like(s_ref)
        n_ref[...] = jnp.zeros_like(n_ref)

    pred = pred_ref[0]                           # (C, hw_tile)  bf16 or f32
    tgt = tgt_ref[0].astype(jnp.int32)           # (1, hw_tile)  int8 -> int32
    C = pred.shape[0]

    # One-hot of the target along the class (sublane) axis.  The (C, 1) iota
    # broadcasts against the (1, hw) target row (no C x hw int32 temporary).
    cls_iota = lax.broadcasted_iota(jnp.int32, (C, 1), 0)
    mask = cls_iota == tgt                       # (C, hw_tile) bool
    onehot = mask.astype(pred.dtype)             # (C, hw_tile)

    # Per-class pixel counts, accumulated in f32 (exact up to 2^24 px/class).
    n_ref[0] += jnp.sum(mask, axis=-1, keepdims=True, dtype=jnp.float32)

    # S_T[k, i] += sum_hw onehot[k, hw] * pred[i, hw]   (MXU, f32 accumulate)
    s_ref[0] += lax.dot_general(
        onehot, pred,
        dimension_numbers=(((1,), (1,)), ((), ())),
        preferred_element_type=jnp.float32)


def _choose_hw_tile(hw, num_class, pred_bytes, tgt_bytes, max_hw_tile,
                    vmem_budget_bytes):
    """Largest lane-dense (multiple-of-128) spatial tile within the VMEM budget.

    Conservative per-hw-column footprint: double-buffered pred + target plus
    the in-kernel one-hot / mask / int32-broadcast temporaries.
    """
    per_hw = (2 * num_class * pred_bytes            # pred double buffer
              + 2 * tgt_bytes                       # target double buffer
              + num_class * (pred_bytes + 1 + 4)    # onehot + mask + i32 bcast
              + 64)                                 # slack
    cap = max(128, (vmem_budget_bytes // per_hw) // 128 * 128)
    tile = min(int(max_hw_tile), cap)
    tile = max(128, (tile // 128) * 128)
    hw_ceil = ((hw + 127) // 128) * 128             # never exceed padded image
    return min(tile, hw_ceil)


def j_loss_pallas(pred, target, weights=None, reduction='none',
                  compute_dtype=jnp.bfloat16, max_hw_tile=65536,
                  vmem_budget_bytes=24 * 1024 * 1024):
    """J-statistic loss. pred: (B, C, H, W) probabilities, target: (B, H, W) int."""
    B, C, H, W = pred.shape
    HW = H * W

    if compute_dtype is not None:
        pred = pred.astype(compute_dtype)
    pred_bytes = jnp.dtype(pred.dtype).itemsize

    # Target travels as int8 when labels (and the padding sentinel C) fit:
    # 4x less target HBM traffic; widened to int32 inside the kernel.
    tgt_dtype = jnp.int8 if C <= 127 else jnp.int32
    tgt_bytes = jnp.dtype(tgt_dtype).itemsize

    hw_tile = _choose_hw_tile(HW, C, pred_bytes, tgt_bytes, max_hw_tile,
                              vmem_budget_bytes)

    # 2-way split of the HW reduction when B == 1 (keeps both v7x TCs busy).
    n_hw_total = pl.cdiv(HW, hw_tile)
    n_split = 2 if (B == 1 and n_hw_total >= 2) else 1
    n_hw_total = pl.cdiv(n_hw_total, n_split) * n_split
    n_hw = n_hw_total // n_split
    HW_pad = n_hw_total * hw_tile

    pred_f = pred.reshape(B, C, HW)
    tgt_f = target.reshape(B, 1, HW).astype(tgt_dtype)
    if HW_pad != HW:
        pad = HW_pad - HW
        # zero pred + sentinel label C: padding contributes nothing to S or n.
        pred_f = jnp.pad(pred_f, ((0, 0), (0, 0), (0, pad)))
        tgt_f = jnp.pad(tgt_f, ((0, 0), (0, 0), (0, pad)), constant_values=C)

    if n_split == 1:
        in_map = lambda bs, k: (bs, 0, k)
    else:
        in_map = lambda bs, k: (bs // n_split, 0, (bs % n_split) * n_hw + k)
    out_map = lambda bs, k: (bs, 0, 0)

    s_part, n_part = pl.pallas_call(
        j_loss_partial_kernel,
        out_shape=(
            jax.ShapeDtypeStruct((B * n_split, C, C), jnp.float32),
            jax.ShapeDtypeStruct((B * n_split, C, 1), jnp.float32),
        ),
        grid_spec=pltpu.PrefetchScalarGridSpec(
            num_scalar_prefetch=0,
            grid=(B * n_split, n_hw),
            in_specs=[
                pl.BlockSpec((1, C, hw_tile), in_map),   # pred tile
                pl.BlockSpec((1, 1, hw_tile), in_map),   # target tile
            ],
            out_specs=[
                pl.BlockSpec((1, C, C), out_map),        # raw S_T partials
                pl.BlockSpec((1, C, 1), out_map),        # per-class counts
            ],
        ),
        compiler_params=pltpu.CompilerParams(
            dimension_semantics=("parallel", "arbitrary"),
            vmem_limit_bytes=32 * 1024 * 1024,
        ),
    )(pred_f, tgt_f)

    # ---- tiny (B, C, C) plain-JAX epilogue (matches torch semantics) ----
    s_t = s_part.reshape(B, n_split, C, C).sum(axis=1)     # S_T[b, k, i] raw
    n_i = n_part.reshape(B, n_split, C, 1).sum(axis=1)     # (B, C, 1)
    s_t = s_t / n_i                                        # 0/0 -> NaN (as torch)
    S = jnp.swapaxes(s_t, -1, -2)                          # S[b, i, k] = sum pred_i * phi_k
    if weights is None:
        w = jnp.ones((C, C), dtype=jnp.float32)
    else:
        w = jnp.asarray(weights, dtype=jnp.float32)
    diag = jnp.diagonal(S, axis1=-2, axis2=-1)[..., None]  # (B, C, 1): S[i, i]
    delta = (diag - S) * 0.5
    eye = jnp.eye(C, dtype=jnp.float32)
    loss = w[None] * jnp.log(0.5 + delta) * (1.0 - eye)[None]
    j = -loss.sum(axis=(-2, -1))

    if reduction == 'mean':
        return j.mean()
    elif reduction == 'sum':
        return j.sum()
    return j


class JLoss:
    """Minimal module-style wrapper mirroring the PyTorch JLoss."""

    def __init__(self, weight=None, reduction='none'):
        self.weight = weight
        self.reduction = reduction

    def __call__(self, pred, target):
        return j_loss_pallas(pred, target, weights=self.weight,
                             reduction=self.reduction)


def j_loss_ref(pred, target, weights=None):
    """Pure-JAX f32 reference mirroring the PyTorch code (no MXU)."""
    B, C, H, W = pred.shape
    pred = pred.astype(jnp.float32)
    if weights is None:
        weights = jnp.ones((C, C), dtype=jnp.float32)
    weights = jnp.asarray(weights, dtype=jnp.float32)
    t1h = jax.nn.one_hot(target, C, axis=1, dtype=jnp.float32)       # (B,C,H,W)
    n_i = t1h.sum(axis=(-2, -1))[..., None, None]                    # (B,C,1,1)
    phi = t1h / n_i
    # S[b, i, k] = sum_hw pred[b, i] * phi[b, k]
    S = jnp.sum(pred[:, :, None] * phi[:, None, :], axis=(-2, -1))   # (B,C,C)
    diag = jnp.diagonal(S, axis1=-2, axis2=-1)[..., None]            # (B,C,1)
    delta = (diag - S) * 0.5
    eye = jnp.eye(C, dtype=jnp.float32)
    loss = weights[None] * jnp.log(0.5 + delta) * (1.0 - eye)[None]
    return -loss.sum(axis=(-2, -1))


if __name__ == "__main__":
    B, C, H, W = 2, 4, 16, 16
    key = jax.random.PRNGKey(0)
    k1, k2, k3 = jax.random.split(key, 3)

    # probability map over classes (like softmax output of a segmentation net)
    logits = jax.random.normal(k1, (B, C, H, W), dtype=jnp.float32)
    pred = jax.nn.softmax(logits, axis=1)
    target = jax.random.randint(k2, (B, H, W), 0, C, dtype=jnp.int32)

    ref = j_loss_ref(pred, target)

    # 1) exact f32 path, single HW tile
    out_f32 = jax.block_until_ready(j_loss_pallas(pred, target, compute_dtype=None))
    assert out_f32.shape == (B,)
    assert jnp.allclose(out_f32, ref, atol=1e-5, rtol=1e-5), (out_f32, ref)

    # 2) bf16-pred path with a tiled HW reduction (max_hw_tile=128 -> 2 tiles)
    out_bf16 = jax.block_until_ready(
        j_loss_pallas(pred, target, compute_dtype=jnp.bfloat16, max_hw_tile=128))
    ref_bf16 = j_loss_ref(pred.astype(jnp.bfloat16).astype(jnp.float32), target)
    assert jnp.allclose(out_bf16, ref_bf16, atol=1e-4, rtol=1e-4), (out_bf16, ref_bf16)

    # 3) B == 1 exercises the 2-way HW-split ("parallel") path
    out_b1 = jax.block_until_ready(
        j_loss_pallas(pred[:1], target[:1], compute_dtype=None, max_hw_tile=128))
    assert jnp.allclose(out_b1, ref[:1], atol=1e-5, rtol=1e-5), (out_b1, ref[:1])

    # 4) non-multiple-of-128 spatial size exercises the padding path (+ weights)
    Hp, Wp = 15, 13
    logits_p = jax.random.normal(k3, (B, C, Hp, Wp), dtype=jnp.float32)
    pred_p = jax.nn.softmax(logits_p, axis=1)
    target_p = jax.random.randint(jax.random.fold_in(k3, 1), (B, Hp, Wp), 0, C,
                                  dtype=jnp.int32)
    wts = jnp.abs(jax.random.normal(jax.random.fold_in(k3, 2), (C, C))) + 0.5
    ref_p = j_loss_ref(pred_p, target_p, weights=wts)
    out_p = jax.block_until_ready(
        j_loss_pallas(pred_p, target_p, weights=wts, compute_dtype=None))
    assert jnp.allclose(out_p, ref_p, atol=1e-5, rtol=1e-5), (out_p, ref_p)

    # 5) reductions
    out_mean = jax.block_until_ready(
        j_loss_pallas(pred, target, reduction='mean', compute_dtype=None))
    assert jnp.allclose(out_mean, ref.mean(), atol=1e-5, rtol=1e-5)

    print("KERNEL_OK")
</pallas_src>

<mosaic_0001>
module attributes {stable_mosaic.version = 11 : i64} {
  func.func @j_loss_partial_kernel(%arg0: i32, %arg1: i32, %arg2: memref<1x4x256xf32, #tpu.memory_space<vmem>>, %arg3: memref<1x1x256xi8, #tpu.memory_space<vmem>>, %arg4: memref<1x4x4xf32, #tpu.memory_space<vmem>>, %arg5: memref<1x4x1xf32, #tpu.memory_space<vmem>>) attributes {dimension_semantics = [#tpu.dimension_semantics<parallel>, #tpu.dimension_semantics<arbitrary>], iteration_bounds = array<i64: 2, 1>, scalar_prefetch = 0 : i64, scratch_operands = 0 : i64, tpu.core_type = #tpu.core_type<tc>, window_params = [{transform_indices = @transform_0, window_bounds = array<i64: 1, 4, 256>}, {transform_indices = @transform_1, window_bounds = array<i64: 1, 1, 256>}, {transform_indices = @transform_2, window_bounds = array<i64: 1, 4, 4>}, {transform_indices = @transform_3, window_bounds = array<i64: 1, 4, 1>}]} {
    %c0_i32 = arith.constant 0 : i32
    %0 = arith.cmpi eq, %arg1, %c0_i32 : i32
    %1 = arith.extui %0 : i1 to i32
    %c0_i32_0 = arith.constant 0 : i32
    %2 = arith.cmpi ne, %1, %c0_i32_0 : i32
    scf.if %2 {
      %cst_19 = arith.constant 0.000000e+00 : f32
      %31 = vector.broadcast %cst_19 : f32 to vector<1x4x4xf32>
      %c0_20 = arith.constant 0 : index
      %c0_21 = arith.constant 0 : index
      %c0_22 = arith.constant 0 : index
      %32 = vector.load %arg4[%c0_20, %c0_21, %c0_22] : memref<1x4x4xf32, #tpu.memory_space<vmem>>, vector<1x4x4xf32>
      tpu.vector_store %arg4[%c0_20, %c0_21, %c0_22], %31 {strides = array<i32>} : memref<1x4x4xf32, #tpu.memory_space<vmem>>, vector<1x4x4xf32>,
      %cst_23 = arith.constant 0.000000e+00 : f32
      %33 = vector.broadcast %cst_23 : f32 to vector<1x4x1xf32>
      %c0_24 = arith.constant 0 : index
      %c0_25 = arith.constant 0 : index
      %c0_26 = arith.constant 0 : index
      %34 = vector.load %arg5[%c0_24, %c0_25, %c0_26] : memref<1x4x1xf32, #tpu.memory_space<vmem>>, vector<1x4x1xf32>
      tpu.vector_store %arg5[%c0_24, %c0_25, %c0_26], %33 {strides = array<i32>} : memref<1x4x1xf32, #tpu.memory_space<vmem>>, vector<1x4x1xf32>,
    } else {
    }
    %c0 = arith.constant 0 : index
    %c0_1 = arith.constant 0 : index
    %c0_2 = arith.constant 0 : index
    %3 = vector.load %arg2[%c0, %c0_1, %c0_2] : memref<1x4x256xf32, #tpu.memory_space<vmem>>, vector<1x4x256xf32>
    %4 = vector.shape_cast %3 : vector<1x4x256xf32> to vector<4x256xf32>
    %c0_3 = arith.constant 0 : index
    %c0_4 = arith.constant 0 : index
    %c0_5 = arith.constant 0 : index
    %5 = vector.load %arg3[%c0_3, %c0_4, %c0_5] : memref<1x1x256xi8, #tpu.memory_space<vmem>>, vector<1x1x256xi8>
    %6 = vector.shape_cast %5 : vector<1x1x256xi8> to vector<1x256xi8>
    %7 = arith.extsi %6 : vector<1x256xi8> to vector<1x256xi32>
    %8 = tpu.iota {dimensions = array<i32: 0>} : vector<4x1xi32>
    %9 = vector.broadcast %8 : vector<4x1xi32> to vector<4x256xi32>
    %10 = vector.broadcast %7 : vector<1x256xi32> to vector<4x256xi32>
    %11 = arith.cmpi eq, %9, %10 : vector<4x256xi32>
    %12 = arith.extui %11 : vector<4x256xi1> to vector<4x256xi32>
    %13 = arith.sitofp %12 : vector<4x256xi32> to vector<4x256xf32>
    %c0_6 = arith.constant 0 : index
    %c0_7 = arith.constant 0 : index
    %c0_8 = arith.constant 0 : index
    %14 = vector.load %arg5[%c0_6, %c0_7, %c0_8] : memref<1x4x1xf32, #tpu.memory_space<vmem>>, vector<1x4x1xf32>
    %15 = vector.shape_cast %14 : vector<1x4x1xf32> to vector<4x1xf32>
    %16 = arith.extui %11 : vector<4x256xi1> to vector<4x256xi32>
    %17 = arith.sitofp %16 : vector<4x256xi32> to vector<4x256xf32>
    %cst = arith.constant dense<0.000000e+00> : vector<4xf32>
    %18 = vector.multi_reduction <add>, %17, %cst [1] : vector<4x256xf32> to vector<4xf32>
    %19 = vector.shape_cast %18 : vector<4xf32> to vector<4x1xf32>
    %20 = arith.addf %15, %19 : vector<4x1xf32>
    %c0_9 = arith.constant 0 : index
    %c0_10 = arith.constant 0 : index
    %c0_11 = arith.constant 0 : index
    %21 = vector.load %arg5[%c0_9, %c0_10, %c0_11] : memref<1x4x1xf32, #tpu.memory_space<vmem>>, vector<1x4x1xf32>
    %22 = vector.shape_cast %21 : vector<1x4x1xf32> to vector<4x1xf32>
    %23 = vector.shape_cast %20 : vector<4x1xf32> to vector<1x4x1xf32>
    tpu.vector_store %arg5[%c0_9, %c0_10, %c0_11], %23 {strides = array<i32>} : memref<1x4x1xf32, #tpu.memory_space<vmem>>, vector<1x4x1xf32>,
    %c0_12 = arith.constant 0 : index
    %c0_13 = arith.constant 0 : index
    %c0_14 = arith.constant 0 : index
    %24 = vector.load %arg4[%c0_12, %c0_13, %c0_14] : memref<1x4x4xf32, #tpu.memory_space<vmem>>, vector<1x4x4xf32>
    %25 = vector.shape_cast %24 : vector<1x4x4xf32> to vector<4x4xf32>
    %cst_15 = arith.constant dense<0.000000e+00> : vector<4x4xf32>
    %26 = tpu.matmul %13, %4, %cst_15 {dimension_numbers = #tpu.dot_dimension_numbers<[1], [1], [0], [0], [0, 0, 1, 0], [], []>} : vector<4x256xf32>, vector<4x256xf32>, vector<4x4xf32> -> vector<4x4xf32>
    %27 = arith.addf %25, %26 : vector<4x4xf32>
    %c0_16 = arith.constant 0 : index
    %c0_17 = arith.constant 0 : index
    %c0_18 = arith.constant 0 : index
    %28 = vector.load %arg4[%c0_16, %c0_17, %c0_18] : memref<1x4x4xf32, #tpu.memory_space<vmem>>, vector<1x4x4xf32>
    %29 = vector.shape_cast %28 : vector<1x4x4xf32> to vector<4x4xf32>
    %30 = vector.shape_cast %27 : vector<4x4xf32> to vector<1x4x4xf32>
    tpu.vector_store %arg4[%c0_16, %c0_17, %c0_18], %30 {strides = array<i32>} : memref<1x4x4xf32, #tpu.memory_space<vmem>>, vector<1x4x4xf32>,
    return
  }
  func.func @transform_0(%arg0: i32, %arg1: i32) -> (i32, i32, i32) {
    %c0_i32 = arith.constant 0 : i32
    %c0_i32_0 = arith.constant 0 : i32
    return %arg0, %c0_i32, %arg1 : i32, i32, i32
  }
  func.func @transform_1(%arg0: i32, %arg1: i32) -> (i32, i32, i32) {
    %c0_i32 = arith.constant 0 : i32
    %c0_i32_0 = arith.constant 0 : i32
    return %arg0, %c0_i32, %arg1 : i32, i32, i32
  }
  func.func @transform_2(%arg0: i32, %arg1: i32) -> (i32, i32, i32) {
    %c0_i32 = arith.constant 0 : i32
    %c0_i32_0 = arith.constant 0 : i32
    %c0_i32_1 = arith.constant 0 : i32
    return %arg0, %c0_i32, %c0_i32_0 : i32, i32, i32
  }
  func.func @transform_3(%arg0: i32, %arg1: i32) -> (i32, i32, i32) {
    %c0_i32 = arith.constant 0 : i32
    %c0_i32_0 = arith.constant 0 : i32
    %c0_i32_1 = arith.constant 0 : i32
    return %arg0, %c0_i32, %c0_i32_0 : i32, i32, i32
  }
}

</mosaic_0001>

<bundles_post_ra>
// kernel: tpu_custom_call.1
= control target key start
LH: loop header
LB: loop body
LE: loop exit
PB: predicated region body
PF: predicated region fallthrough
CT: control target
= control target key end

     0   :  { %9 = vsyncpa [#allocation3], 0  ;;  %s832_s0 = inlined_call_operand.hbm [shape: f32[2,4,256], index: 0, kind: input, shape index: {}]   ;;  %s833_s1 = inlined_call_operand.vmem [shape: s8[2,1,256], index: 1, kind: input, shape index: {}]   ;;  %s834_s2 = inlined_call_operand.hbm [shape: f32[2,4,4], index: 2, kind: output, shape index: {0}]   ;;  %s835_s3 = inlined_call_operand.vmem [shape: f32[2,4,1], index: 3, kind: output, shape index: {1}]  }
   0x1   :  { %11 = vsyncpa [#allocation3 + $0x1], 0 }
   0x2   :  { %12 = vsyncpa [#allocation4], 0 }
   0x3   :  { %14 = vsyncpa [#allocation4 + $0x1], 0  ;;  %s697_s12 = smov 0   ;;  %s699_s13 = smov 0  }
   0x4   :  { %s701_s14 = smov 0   ;;  %s703_s15 = smov 0  }
   0x5   :  { %s705_s16 = smov 0   ;;  %s707_s17 = smov 0  }
   0x6 LB: > { %s476_s18 = sadd.s32 4294967295, %s673_s17   ;;  %s477_s19 = sadd.s32 4294967294, %s673_s17   ;;  %s673_s17 = sphi %s707_s17, %s20_s17   ;;  %s669_s16 = sphi %s705_s16, %s844_s16   ;;  %s665_s15 = sphi %s703_s15, %s843_s15   ;;  %s661_s14 = sphi %s701_s14, %s842_s14   ;;  %s657_s13 = sphi %s699_s13, %s841_s13   ;;  %s653_s12 = sphi %s697_s12, %s840_s12  }
   0x7   : > { %s32_s20 = sadd.s32 1, %s669_s16  ;;  %s41_s21 = sadd.s32 1, %s661_s14 }
   0x8   : > { %p34_p0 = scmp.ge.s32.totalorder %s32_s20, 2  ;;  %p48_p1 = scmp.ne.s32.totalorder %s661_s14, %s657_s13 }
   0x9   : > { %p49_p2 = scmp.eq.s32.totalorder %s673_s17, 0  ;;  %p54_p3 = scmp.ne.s32.totalorder %s657_s13, %s653_s12 }
   0xa   : > { %s846_s20 = smov (%p34_p0, %s32_s20), 0  ;;  %p55_p5 = scmp.eq.s32.totalorder %s476_s18, 0 }
   0xb   : > { %p738_p4 = por %p49_p2, %p48_p1  ;;  %s36_s23 = ssub.s32 %s669_s16, %s846_s20 }
   0xc   : > { %p106_p6 = scmp.eq.s32.totalorder %s476_s18, 1  ;;  %p39_p7 = scmp.eq.s32.totalorder %s36_s23, 0 }
   0xd   : > { %p744_p8 = por %p55_p5, %p54_p3  ;;  %p112_p10 = scmp.eq.s32.totalorder %s477_s19, 1 }
   0xe   : > { %p748_p9 = por %p106_p6, %p48_p1  ;;  %p479_p12 = scmp.ge.s32.totalorder %s673_s17, 2 }
   0xf   : > { %s753_s26 = scalar_select %p39_p7, %s661_s14, %s41_s21  }
  0x10   : > { %p755_p11 = por %p112_p10, %p54_p3  ;;  %p509_p13 = scmp.lt.s32.totalorder %s673_s17, 2 }
  0x11   : > { %s158_s28 = sand.u32 1, %s661_s14   ;;  %s496_s30 = sshll.u32 %s669_s16, 3 }
  0x12   : > { %s480_s29 = sshll.u32 %s158_s28, 3  ;;  %s169_s6 = scalar_lea.hbm %s832_s0, %s496_s30 }
  0x13   : > { %s162_s7 = scalar_lea.vmem [#allocation2], %s480_s29  ;;  %s171_s9 = sshll.u32 %s169_s6, 4  ;;  %s172_s9 = int_to_ptr.hbm [resolvable:$true] %s171_s9 }
  0x14   : > { %s173_s8 = sshll.u32 %s162_s7, 4  ;;  %p502_p0 = pnand %p509_p13, %p738_p4  ;;  %s174_s8 = int_to_ptr.vmem [resolvable:$true] %s173_s8 }
  0x15   : > { %p483_p1 = scmp.ge.s32.totalorder %s673_s17, 1  ;;  %p190_p2 = scmp.lt.s32.totalorder %s673_s17, 3 }
  0x16   : > { %s159_s10 = scalar_lea.sflag [#allocation3], %s158_s28 }
  0x17   : > { %504 = dma.hbm_to_vmem [thread:$0]  (!%p502_p0), %s172_s9, 128, %s174_s8, %s159_s10  }
  0x18   : > { %p191_p3 = pnand %p483_p1, %p190_p2 }
  0x19   : > { %s771_s11 = sand.u32 (!%p191_p3), 1, %s657_s13  }
  0x1a   : > { %194 = sbr.rel (%p191_p3) target bundleno = 179 (0xb3), region = 28  ;;  %s484_s18 = sshll.u32 (!%p191_p3), %s771_s11, 3 }
  0x1b   : > { %s197_s19 = scalar_lea.sflag (!%p191_p3), [#allocation3], %s771_s11  ;;  %s200_s21 = scalar_lea.vmem (!%p191_p3), [#allocation2], %s484_s18 }
  0x1f   : > { %644 = dma.done.wait (%p744_p8), %s197_s19, 128  }
  0x20   : > { %646 = vsyncadd (%p744_p8), %s197_s19, 4294967168  ;;  %p238_p4 = scmp.lt.s32.totalorder %s665_s15, 1  ;;  %v258_v0 = vld [vmem:[%s200_s21] sm:$0xff]  ;;  %v261_v2 = vlaneseq  ;;  %vm274_vm0 = vcmask 1043456   ;;  %v675_v11 = vmov 0.0   ;;  %v676_v17 = vmov 1.0  }
  0x21   : > { %285 = vst [vmem:[#allocation1] ss:$2 sm:$0xff] %v258_v0  ;;  %s485_s24 = sshll.u32 %s771_s11, 2  ;;  %vm254_vm3 = vcmask 27648   ;;  %vm256_vm4 = vcmask 3072   ;;  %s493_s9 = sshll.u32 %s665_s15, 2 }
  0x22   : > { %s781_s22 = scalar_select %p238_p4, %s665_s15, 1  ;;  %v262_v6 = vshrl.u32 %v261_v2, 7 }
  0x23   : > { %s229_s8 = scalar_lea.vmem [#allocation5], %s485_s24  ;;  %s348_s19 = scalar_lea.hbm %s834_s2, %s493_s9 }
  0x24   : > { %s486_s23 = sshll.u32 %s781_s22, 1  ;;  %s487_s4 = sshll.u32 %s781_s22, 2  ;;  %255 = vst.msk [vmem:[%s229_s8] sm:$0xf] %vm254_vm3, %v675_v11 }
  0x25   : > { %s244_s30 = scalar_lea.vmem %s833_s1, %s486_s23  ;;  %s249_s7 = scalar_lea.vmem %s835_s3, %s487_s4 }
  0x26   : > { %v259_v1 = vld [vmem:[%s244_s30] sm:$0x3]  ;;  %257 = vst.msk [vmem:[%s249_s7] sm:$0xf] %vm256_vm4, %v675_v11  ;;  %s350_s21 = sshll.u32 %s229_s8, 4  ;;  %s352_s22 = sshll.u32 %s348_s19, 4  ;;  %s351_s21 = int_to_ptr.vmem [resolvable:$true] %s350_s21  ;;  %s353_s22 = int_to_ptr.hbm [resolvable:$true] %s352_s22 }
  0x27   : > { %v260_v3 = vunpack.c.0.s8 %v259_v1  ;;  %s334_s23 = scalar_lea.sflag [#allocation4], %s771_s11  ;;  %s605_s28 = sshra.s32 %s353_s22, 4  ;;  %s606_s28 = int_to_ptr.hbm [resolvable:$true] %s605_s28 }
  0x28   : > { %v286_v9 = vld.sshfl [vmem:[#allocation1] sm:$0xff pattern:$0x75316420]  ;;  %v287_v10 = vld.sshfl [vmem:[#allocation1 + $0x8] sm:$0xff pattern:$0x75316420]  ;;  %p612_p8 = scmp.lt.s32.totalorder %s606_s28, %s834_s2 }
  0x29   : > { %v263_v4 = vperm.slane %v260_v3, 0  ;;  %v264_v5 = vperm.slane %v260_v3, 4  ;;  %305 = vmatpush.xpose.msra.mxu0 %v286_v9  ;;  %325 = vmatpush.xpose.msra.mxu1 %v287_v10  ;;  %s607_s15 = scalar_lea.hbm %s606_s28, 4  ;;  %s611_s24 = scalar_lea.hbm %s834_s2, 8 }
  0x2a   : > { %p608_p5 = scmp.ne.s32.totalorder %s606_s28, %s607_s15  ;;  %p613_p10 = scmp.lt.s32.totalorder %s611_s24, %s607_s15 }
  0x2b   : > { %v265_v7 = vperm.slane %v263_v4, 0  ;;  %v266_v8 = vperm.slane %v264_v5, 0  ;;  %v283_v22 = vld [vmem:[%s229_s8] sm:$0xf] }
  0x2c   : > { %p609_p6 = pnand %p608_p5, %p748_p9  ;;  %p614_p13 = por %p613_p10, %p612_p8 }
  0x2d   : > { %vm267_vm1 = vcmp.eq.s32.totalorder %v262_v6, %v265_v7  ;;  %vm268_vm2 = vcmp.eq.s32.totalorder %v262_v6, %v266_v8  ;;  %v273_v18 = vld [vmem:[%s249_s7] sm:$0xf] }
  0x2e   : > { %v488_v12 = vsel %vm267_vm1, 1.0, %v675_v11  ;;  %v489_v13 = vsel %vm268_vm2, 1.0, %v675_v11  ;;  %490 = vmatmul.msk.f32.vlgmr.msra.gmra.mxu0 %vm267_vm1, %v676_v17  ;;  %491 = vmatmul.msk.f32.vlgmr.msra.gmra.mxu1 %vm268_vm2, %v676_v17  ;;  %p610_p7 = pneg %p609_p6 }
  0x2f   : > { %v275_v14 = vsel %vm274_vm0, %v488_v12, 0.0  ;;  %v276_v15 = vsel %vm274_vm0, %v489_v13, 0.0 }
  0x30   : > { %v277_v16 = vadd.f32 %v276_v15, %v275_v14  ;;  %p615_p0 = pnand %p614_p13, %p610_p7 }
  0x32   : > { %278 = vadd.xlane.f32.xlu0 %v277_v16 }
  0xa5   : > { %v279_v19 = vpop.xlane.xlu0 %278 }
  0xa6   : > { %v280_v20 = vadd.f32 %v279_v19, %v273_v18 }
  0xa8   : > { %282 = vst.msk [vmem:[%s249_s7] sm:$0xf] %vm256_vm4, %v280_v20 }
  0xab   : > { %v307_v21 = vpop.f32.mrf.mxu0  ;;  %v327_v23 = vpop.f32.mrf.mxu1 }
  0xac   : > { %v328_v24 = vadd.f32 %v327_v23, %v307_v21 }
  0xae   : > { %v330_v25 = vadd.f32 %v328_v24, %v283_v22 }
  0xb0   : > { %332 = vst.msk [vmem:[%s229_s8] sm:$0xf] %vm254_vm3, %v330_v25 }
  0xb1   : > { %618 = shalt.err (!%p615_p0)
}
  0xb2   : > { %499 = dma.vmem_to_hbm [thread:$0]  (%p748_p9), %s351_s21, 64, %s353_s22, %s334_s23  }
  0xb3 PF: > { %s367_s11 = sand.u32 1, %s653_s12   ;;  %p506_p1 = pnand %p479_p12, %p755_p11 }
  0xb4   : > { %s368_s6 = scalar_lea.sflag [#allocation4], %s367_s11 }
  0xb5   : > { %p507_p2 = pneg %p506_p1 }
  0xb7   : > { %648 = dma.done.wait (%p507_p2), %s368_s6, 64  }
  0xb8   : > { %650 = vsyncadd (%p507_p2), %s368_s6, 4294967232  ;;  %s20_s17 = sadd.s32 1, %s673_s17   ;;  %s840_s12 = smov %s657_s13 }
  0xb9   : > { %p17_p3 = scmp.ge.s32.totalorder %s20_s17, 4   ;;  %s841_s13 = smov %s661_s14 }
  0xba   : > { %s842_s14 = smov %s753_s26  ;;  %s843_s15 = smov %s669_s16 }
  0xbb   : > { %s844_s16 = smov %s846_s20  ;;  %19 = sbr.rel (!%p17_p3) target bundleno = 6 (0x6), region = 92 }
  0xc0   :  { %381 = vsyncpa [#allocation3], 1 }
  0xc1   :  { %383 = vsyncpa [#allocation3 + $0x1], 1 }
  0xc2   :  { %384 = vsyncpa [#allocation4], 1 }
  0xc3   :  { %386 = vsyncpa [#allocation4 + $0x1], 1 }

</bundles_post_ra>
